<compile_context>
chip_gen: v7x
topology: tpu7x:2x2x1
jax: 0.10.0
libtpu: 0.0.40
codegen_flags: <defaults>
</compile_context>

<pallas_src>
import jax
import jax.numpy as jnp
from jax.experimental import pallas as pl
from jax.experimental.pallas import tpu as pltpu

# ----------------------------------------------------------------------------
# Static layer geometry of the Agent MLP.
# ----------------------------------------------------------------------------
_LAYER_DIMS = ((8, 16), (16, 32), (32, 16), (16, 4))   # (fan_in, fan_out)
_IN_DIM = _LAYER_DIMS[0][0]                             # 8
_OUT_DIM = _LAYER_DIMS[-1][1]                           # 4


def _round_up(n, m):
    return ((n + m - 1) // m) * m


# ----------------------------------------------------------------------------
# Kernel: whole 4-layer MLP for one tile of batch "rows".
# Each row holds G samples interleaved along lanes (G*8 input lanes).
# ----------------------------------------------------------------------------
def _mlp_kernel(x_ref, w1_ref, b1_ref, w2_ref, b2_ref, w3_ref, b3_ref,
                w4_ref, b4_ref, out_ref):
    """x_ref: (tr, G*8) f32, w_l: (G*f_in, G*f_out) block-diag (bf16 or f32),
    b_l: (1, G*f_out) f32, out_ref: (tr, G*4) f32."""
    h = x_ref[...]                                         # (tr, G*8) f32
    layers = ((w1_ref, b1_ref, False), (w2_ref, b2_ref, False),
              (w3_ref, b3_ref, False), (w4_ref, b4_ref, True))
    for w_ref, b_ref, is_last in layers:
        w = w_ref[...]
        # MXU operands in the weight dtype (bf16 fast path), f32 accumulation.
        h = jnp.dot(h.astype(w.dtype), w,
                    preferred_element_type=jnp.float32) + b_ref[...]
        if not is_last:
            h = jnp.tanh(h)                                # f32 EUP
    out_ref[...] = h.astype(out_ref.dtype)                 # (tr, G*4)


# ----------------------------------------------------------------------------
# Tile sizing: generation-aware VMEM budget.
# ----------------------------------------------------------------------------
def _pick_tile_rows(n_rows, group, weight_bytes, max_tile_rows=None):
    try:
        cap = int(pltpu.get_tpu_info().vmem_capacity_bytes)
    except Exception:
        cap = 64 * 1024 * 1024            # assume smallest (v7x-class) VMEM
    # 64 MiB scoped limit on v5e/v6e (128 MiB physical), 32 MiB on v7x (64 MiB).
    vmem_limit = min(cap // 2, 64 * 1024 * 1024)

    # Conservative VMEM bytes per tile row: double-buffered x / out blocks plus
    # f32+bf16 activation temporaries at widths G*{16,32,16,4}.
    per_row = (2 * group * _IN_DIM * 4
               + 2 * max(group * _OUT_DIM, 128) * 4
               + 6 * group * 64)
    budget = vmem_limit - 2 * weight_bytes - (2 << 20)
    tr = max(budget // per_row, 8)
    tr = min(tr, 16384)
    if max_tile_rows is not None:
        tr = min(tr, max_tile_rows)
    tr = max((tr // 8) * 8, 8)

    if n_rows <= tr:
        if n_rows >= 256:
            # Split large single-tile batches so both TensorCores (v7x) get work.
            tr = _round_up(pl.cdiv(n_rows, 2), 8)
        else:
            tr = n_rows                   # single full block (exempt from 8-row rule)
    return tr, vmem_limit


# ----------------------------------------------------------------------------
# Wrapper: PyTorch interface x:(B,8) -> logits:(B,4).
# ----------------------------------------------------------------------------
def agent_forward(x, packed_params, *, max_tile_rows=None):
    """Run Agent.forward as a batch-tiled Pallas TPU kernel.

    x             : (B, 8) float32
    packed_params : output of pack_params() (block-diag weights + tiled biases)
    returns       : (B, 4) float32 logits
    """
    (w1, b1), (w2, b2), (w3, b3), (w4, b4) = packed_params
    group = w1.shape[0] // _IN_DIM
    x = x.astype(jnp.float32)
    B = x.shape[0]

    n_rows = pl.cdiv(B, group)
    weight_bytes = sum(int(w.size) * w.dtype.itemsize + int(b.size) * b.dtype.itemsize
                       for w, b in packed_params)
    tr, vmem_limit = _pick_tile_rows(n_rows, group, weight_bytes, max_tile_rows)
    n_tiles = pl.cdiv(n_rows, tr)
    rows_pad = n_tiles * tr
    b_pad = rows_pad * group

    if b_pad != B:
        # Only batches that are not already tile-aligned pay this pad copy.
        x = jnp.pad(x, ((0, b_pad - B), (0, 0)))
    # Contiguous (free) reshape: G samples interleaved along the lane dim.
    xg = x.reshape(rows_pad, group * _IN_DIM)

    in_w = group * _IN_DIM
    out_w = group * _OUT_DIM

    # Advisory cost: MXU flops actually issued (block-diag), tanh count, HBM bytes.
    flops = 2 * rows_pad * sum((group * fi) * (group * fo) for fi, fo in _LAYER_DIMS)
    transcendentals = b_pad * sum(fo for _, fo in _LAYER_DIMS[:-1])
    bytes_accessed = xg.size * 4 + rows_pad * out_w * 4 + weight_bytes

    const = lambda i: (0, 0)              # resident weight/bias blocks
    out = pl.pallas_call(
        _mlp_kernel,
        out_shape=jax.ShapeDtypeStruct((rows_pad, out_w), jnp.float32),
        grid=(n_tiles,),
        in_specs=[
            pl.BlockSpec((tr, in_w), lambda i: (i, 0)),   # streamed batch tile
            pl.BlockSpec(w1.shape, const), pl.BlockSpec(b1.shape, const),
            pl.BlockSpec(w2.shape, const), pl.BlockSpec(b2.shape, const),
            pl.BlockSpec(w3.shape, const), pl.BlockSpec(b3.shape, const),
            pl.BlockSpec(w4.shape, const), pl.BlockSpec(b4.shape, const),
        ],
        out_specs=pl.BlockSpec((tr, out_w), lambda i: (i, 0)),
        compiler_params=pltpu.CompilerParams(
            dimension_semantics=("parallel",),
            vmem_limit_bytes=int(vmem_limit),
        ),
        cost_estimate=pl.CostEstimate(
            flops=int(flops),
            transcendentals=int(transcendentals),
            bytes_accessed=int(bytes_accessed)),
    )(xg, w1, b1, w2, b2, w3, b3, w4, b4)

    out = out.reshape(b_pad, _OUT_DIM)    # contiguous (free) reshape back to (B,4)
    return out if b_pad == B else out[:B]


# ----------------------------------------------------------------------------
# Parameter helpers (PyTorch nn.Linear layout: W (out,in), b (out,)).
# ----------------------------------------------------------------------------
def init_params(key):
    """U(-1/sqrt(fan_in), 1/sqrt(fan_in)), like PyTorch Linear default init."""
    params = {}
    for i, (fan_in, fan_out) in enumerate(_LAYER_DIMS, start=1):
        key, kw, kb = jax.random.split(key, 3)
        bound = float(fan_in) ** -0.5
        params[f"w{i}"] = jax.random.uniform(
            kw, (fan_out, fan_in), jnp.float32, minval=-bound, maxval=bound)
        params[f"b{i}"] = jax.random.uniform(
            kb, (fan_out,), jnp.float32, minval=-bound, maxval=bound)
    return params


def pack_params(params, *, group=16, compute_dtype=jnp.bfloat16):
    """Block-diagonally replicate each layer `group` times: W_bd = kron(I_G, W.T),
    b_rep = tile(b, G).  Sample g of a row uses lane block g of every layer, so
    the packing is consistent across layers (one interleave in, one out)."""
    packed = []
    eye = jnp.eye(group, dtype=jnp.float32)
    for i, (fan_in, fan_out) in enumerate(_LAYER_DIMS, start=1):
        wt = params[f"w{i}"].T.astype(jnp.float32)                  # (f_in, f_out)
        wbd = jnp.kron(eye, wt).astype(compute_dtype)               # (G*f_in, G*f_out)
        brep = jnp.tile(params[f"b{i}"], group).reshape(
            1, group * fan_out).astype(jnp.float32)
        packed.append((wbd, brep))
    return tuple(packed)


def reference_forward(x, params):
    """Pure-JAX reference (PyTorch semantics: y = x @ W.T + b), high precision."""
    p = jax.lax.Precision.HIGHEST
    h = x.astype(jnp.float32)
    h = jnp.tanh(jnp.dot(h, params["w1"].T, precision=p) + params["b1"])
    h = jnp.tanh(jnp.dot(h, params["w2"].T, precision=p) + params["b2"])
    h = jnp.tanh(jnp.dot(h, params["w3"].T, precision=p) + params["b3"])
    return jnp.dot(h, params["w4"].T, precision=p) + params["b4"]


# ----------------------------------------------------------------------------
# Self-test.
# ----------------------------------------------------------------------------
if __name__ == "__main__":
    key = jax.random.PRNGKey(0)
    key, kx1, kx2 = jax.random.split(key, 3)
    params = init_params(key)
    packed_f32 = pack_params(params, compute_dtype=jnp.float32)
    packed_bf16 = pack_params(params, compute_dtype=jnp.bfloat16)

    # Small batch (pads to one sample group, single grid step, f32 weights).
    x1 = jax.random.normal(kx1, (8, _IN_DIM), dtype=jnp.float32)
    ref1 = reference_forward(x1, params)
    out1 = jax.block_until_ready(agent_forward(x1, packed_f32))
    assert out1.shape == (8, _OUT_DIM), out1.shape
    assert jnp.allclose(out1, ref1, atol=1e-2, rtol=1e-2), "f32 path mismatch (B=8)"

    # Group-unaligned batch; cap the tile to force several grid steps and
    # exercise the padded / multi-tile pipeline path.
    x2 = jax.random.normal(kx2, (4100, _IN_DIM), dtype=jnp.float32)
    ref2 = reference_forward(x2, params)
    out2 = jax.block_until_ready(agent_forward(x2, packed_f32, max_tile_rows=64))
    assert out2.shape == (4100, _OUT_DIM), out2.shape
    assert jnp.allclose(out2, ref2, atol=1e-2, rtol=1e-2), "f32 path mismatch (B=4100)"

    # bf16 fast path (MXU-native operands) with auto tile sizing; looser
    # tolerance vs the f32 reference because weights/activations are bf16-rounded.
    out3 = jax.block_until_ready(agent_forward(x2, packed_bf16))
    assert out3.shape == (4100, _OUT_DIM), out3.shape
    assert jnp.allclose(out3, ref2, atol=7e-2, rtol=7e-2), "bf16 path mismatch (B=4100)"

    print("KERNEL_OK")
</pallas_src>

<mosaic_0001>
module attributes {stable_mosaic.version = 11 : i64} {
  func.func @_mlp_kernel(%arg0: i32, %arg1: memref<1x128xf32, #tpu.memory_space<vmem>>, %arg2: memref<128x256xf32, #tpu.memory_space<vmem>>, %arg3: memref<1x256xf32, #tpu.memory_space<vmem>>, %arg4: memref<256x512xf32, #tpu.memory_space<vmem>>, %arg5: memref<1x512xf32, #tpu.memory_space<vmem>>, %arg6: memref<512x256xf32, #tpu.memory_space<vmem>>, %arg7: memref<1x256xf32, #tpu.memory_space<vmem>>, %arg8: memref<256x64xf32, #tpu.memory_space<vmem>>, %arg9: memref<1x64xf32, #tpu.memory_space<vmem>>, %arg10: memref<1x64xf32, #tpu.memory_space<vmem>>) attributes {dimension_semantics = [#tpu.dimension_semantics<parallel>], iteration_bounds = array<i64: 1>, scalar_prefetch = 0 : i64, scratch_operands = 0 : i64, tpu.core_type = #tpu.core_type<tc>, window_params = [{transform_indices = @transform_0, window_bounds = array<i64: 1, 128>}, {pipeline_mode = #tpu.pipeline_mode<synchronous>, transform_indices = @transform_1, window_bounds = array<i64: 128, 256>}, {pipeline_mode = #tpu.pipeline_mode<synchronous>, transform_indices = @transform_2, window_bounds = array<i64: 1, 256>}, {pipeline_mode = #tpu.pipeline_mode<synchronous>, transform_indices = @transform_3, window_bounds = array<i64: 256, 512>}, {pipeline_mode = #tpu.pipeline_mode<synchronous>, transform_indices = @transform_4, window_bounds = array<i64: 1, 512>}, {pipeline_mode = #tpu.pipeline_mode<synchronous>, transform_indices = @transform_5, window_bounds = array<i64: 512, 256>}, {pipeline_mode = #tpu.pipeline_mode<synchronous>, transform_indices = @transform_6, window_bounds = array<i64: 1, 256>}, {pipeline_mode = #tpu.pipeline_mode<synchronous>, transform_indices = @transform_7, window_bounds = array<i64: 256, 64>}, {pipeline_mode = #tpu.pipeline_mode<synchronous>, transform_indices = @transform_8, window_bounds = array<i64: 1, 64>}, {transform_indices = @transform_9, window_bounds = array<i64: 1, 64>}]} {
    %c0 = arith.constant 0 : index
    %c0_0 = arith.constant 0 : index
    %0 = vector.load %arg1[%c0, %c0_0] : memref<1x128xf32, #tpu.memory_space<vmem>>, vector<1x128xf32>
    %c0_1 = arith.constant 0 : index
    %c0_2 = arith.constant 0 : index
    %1 = vector.load %arg2[%c0_1, %c0_2] : memref<128x256xf32, #tpu.memory_space<vmem>>, vector<128x256xf32>
    %cst = arith.constant dense<0.000000e+00> : vector<1x256xf32>
    %2 = tpu.matmul %0, %1, %cst {dimension_numbers = #tpu.dot_dimension_numbers<[1], [0], [0], [1], [0, 0, 1, 1], [], []>} : vector<1x128xf32>, vector<128x256xf32>, vector<1x256xf32> -> vector<1x256xf32>
    %c0_3 = arith.constant 0 : index
    %c0_4 = arith.constant 0 : index
    %3 = vector.load %arg3[%c0_3, %c0_4] : memref<1x256xf32, #tpu.memory_space<vmem>>, vector<1x256xf32>
    %4 = arith.addf %2, %3 : vector<1x256xf32>
    %5 = math.tanh %4 : vector<1x256xf32>
    %c0_5 = arith.constant 0 : index
    %c0_6 = arith.constant 0 : index
    %6 = vector.load %arg4[%c0_5, %c0_6] : memref<256x512xf32, #tpu.memory_space<vmem>>, vector<256x512xf32>
    %cst_7 = arith.constant dense<0.000000e+00> : vector<1x512xf32>
    %7 = tpu.matmul %5, %6, %cst_7 {dimension_numbers = #tpu.dot_dimension_numbers<[1], [0], [0], [1], [0, 0, 1, 1], [], []>} : vector<1x256xf32>, vector<256x512xf32>, vector<1x512xf32> -> vector<1x512xf32>
    %c0_8 = arith.constant 0 : index
    %c0_9 = arith.constant 0 : index
    %8 = vector.load %arg5[%c0_8, %c0_9] : memref<1x512xf32, #tpu.memory_space<vmem>>, vector<1x512xf32>
    %9 = arith.addf %7, %8 : vector<1x512xf32>
    %10 = math.tanh %9 : vector<1x512xf32>
    %c0_10 = arith.constant 0 : index
    %c0_11 = arith.constant 0 : index
    %11 = vector.load %arg6[%c0_10, %c0_11] : memref<512x256xf32, #tpu.memory_space<vmem>>, vector<512x256xf32>
    %cst_12 = arith.constant dense<0.000000e+00> : vector<1x256xf32>
    %12 = tpu.matmul %10, %11, %cst_12 {dimension_numbers = #tpu.dot_dimension_numbers<[1], [0], [0], [1], [0, 0, 1, 1], [], []>} : vector<1x512xf32>, vector<512x256xf32>, vector<1x256xf32> -> vector<1x256xf32>
    %c0_13 = arith.constant 0 : index
    %c0_14 = arith.constant 0 : index
    %13 = vector.load %arg7[%c0_13, %c0_14] : memref<1x256xf32, #tpu.memory_space<vmem>>, vector<1x256xf32>
    %14 = arith.addf %12, %13 : vector<1x256xf32>
    %15 = math.tanh %14 : vector<1x256xf32>
    %c0_15 = arith.constant 0 : index
    %c0_16 = arith.constant 0 : index
    %16 = vector.load %arg8[%c0_15, %c0_16] : memref<256x64xf32, #tpu.memory_space<vmem>>, vector<256x64xf32>
    %cst_17 = arith.constant dense<0.000000e+00> : vector<1x64xf32>
    %17 = tpu.matmul %15, %16, %cst_17 {dimension_numbers = #tpu.dot_dimension_numbers<[1], [0], [0], [1], [0, 0, 1, 1], [], []>} : vector<1x256xf32>, vector<256x64xf32>, vector<1x64xf32> -> vector<1x64xf32>
    %c0_18 = arith.constant 0 : index
    %c0_19 = arith.constant 0 : index
    %18 = vector.load %arg9[%c0_18, %c0_19] : memref<1x64xf32, #tpu.memory_space<vmem>>, vector<1x64xf32>
    %19 = arith.addf %17, %18 : vector<1x64xf32>
    %c0_20 = arith.constant 0 : index
    %c0_21 = arith.constant 0 : index
    %20 = vector.load %arg10[%c0_20, %c0_21] : memref<1x64xf32, #tpu.memory_space<vmem>>, vector<1x64xf32>
    tpu.vector_store %arg10[%c0_20, %c0_21], %19 {strides = array<i32>} : memref<1x64xf32, #tpu.memory_space<vmem>>, vector<1x64xf32>,
    return
  }
  func.func @transform_0(%arg0: i32) -> (i32, i32) {
    %c0_i32 = arith.constant 0 : i32
    %c0_i32_0 = arith.constant 0 : i32
    return %arg0, %c0_i32 : i32, i32
  }
  func.func @transform_1(%arg0: i32) -> (i32, i32) {
    %c0_i32 = arith.constant 0 : i32
    %c0_i32_0 = arith.constant 0 : i32
    %c0_i32_1 = arith.constant 0 : i32
    return %c0_i32, %c0_i32_0 : i32, i32
  }
  func.func @transform_2(%arg0: i32) -> (i32, i32) {
    %c0_i32 = arith.constant 0 : i32
    %c0_i32_0 = arith.constant 0 : i32
    %c0_i32_1 = arith.constant 0 : i32
    return %c0_i32, %c0_i32_0 : i32, i32
  }
  func.func @transform_3(%arg0: i32) -> (i32, i32) {
    %c0_i32 = arith.constant 0 : i32
    %c0_i32_0 = arith.constant 0 : i32
    %c0_i32_1 = arith.constant 0 : i32
    return %c0_i32, %c0_i32_0 : i32, i32
  }
  func.func @transform_4(%arg0: i32) -> (i32, i32) {
    %c0_i32 = arith.constant 0 : i32
    %c0_i32_0 = arith.constant 0 : i32
    %c0_i32_1 = arith.constant 0 : i32
    return %c0_i32, %c0_i32_0 : i32, i32
  }
  func.func @transform_5(%arg0: i32) -> (i32, i32) {
    %c0_i32 = arith.constant 0 : i32
    %c0_i32_0 = arith.constant 0 : i32
    %c0_i32_1 = arith.constant 0 : i32
    return %c0_i32, %c0_i32_0 : i32, i32
  }
  func.func @transform_6(%arg0: i32) -> (i32, i32) {
    %c0_i32 = arith.constant 0 : i32
    %c0_i32_0 = arith.constant 0 : i32
    %c0_i32_1 = arith.constant 0 : i32
    return %c0_i32, %c0_i32_0 : i32, i32
  }
  func.func @transform_7(%arg0: i32) -> (i32, i32) {
    %c0_i32 = arith.constant 0 : i32
    %c0_i32_0 = arith.constant 0 : i32
    %c0_i32_1 = arith.constant 0 : i32
    return %c0_i32, %c0_i32_0 : i32, i32
  }
  func.func @transform_8(%arg0: i32) -> (i32, i32) {
    %c0_i32 = arith.constant 0 : i32
    %c0_i32_0 = arith.constant 0 : i32
    %c0_i32_1 = arith.constant 0 : i32
    return %c0_i32, %c0_i32_0 : i32, i32
  }
  func.func @transform_9(%arg0: i32) -> (i32, i32) {
    %c0_i32 = arith.constant 0 : i32
    %c0_i32_0 = arith.constant 0 : i32
    return %arg0, %c0_i32 : i32, i32
  }
}

</mosaic_0001>

<bundles_post_ra>
// kernel: tpu_custom_call.1
= control target key start
LH: loop header
LB: loop body
LE: loop exit
PB: predicated region body
PF: predicated region fallthrough
CT: control target
= control target key end

     0   :  { %14 = vsyncpa [#allocation3], 0  ;;  %s1661_s0 = inlined_call_operand.vmem [shape: f32[1,128], index: 0, kind: input, shape index: {}]   ;;  %s1662_s1 = inlined_call_operand.vmem [shape: f32[128,256], index: 1, kind: input, shape index: {}]   ;;  %s1663_s2 = inlined_call_operand.vmem [shape: f32[1,256], index: 2, kind: input, shape index: {}]   ;;  %s1664_s3 = inlined_call_operand.hbm [shape: f32[256,512], index: 3, kind: input, shape index: {}]   ;;  %s1665_s4 = inlined_call_operand.vmem [shape: f32[1,512], index: 4, kind: input, shape index: {}]   ;;  %s1666_s5 = inlined_call_operand.hbm [shape: f32[512,256], index: 5, kind: input, shape index: {}]   ;;  %s1667_s6 = inlined_call_operand.vmem [shape: f32[1,256], index: 6, kind: input, shape index: {}]   ;;  %s1668_s7 = inlined_call_operand.vmem [shape: f32[256,64], index: 7, kind: input, shape index: {}]   ;;  %s1669_s8 = inlined_call_operand.vmem [shape: f32[1,64], index: 8, kind: input, shape index: {}]   ;;  %s1670_s9 = inlined_call_operand.hbm [shape: f32[1,64], index: 9, kind: output, shape index: {}]  }
   0x1   :  { %15 = vsyncpa [#allocation6], 0 }
   0x2   :  { %16 = vsyncpa [#allocation4], 0  ;;  %s1335_s30 = smov [#allocation2]   ;;  %s1263_s13 = scalar_lea.hbm %s1664_s3, 16384 }
   0x3   :  { %s28_s10 = sshll.u32 %s1335_s30, 4  ;;  %p1264_p0 = scmp.ne.s32.totalorder %s1664_s3, %s1263_s13  ;;  %s29_s10 = int_to_ptr.vmem [resolvable:$true] %s28_s10 }
   0x4   :  { %p1267_p1 = scmp.lt.u32.totalorder %s1263_s13, %s1664_s3 }
   0x6   :  { %p1269_p2 = pnand %p1267_p1, %p1264_p0 }
   0x8   :  { %1272 = shalt.err (!%p1269_p2)
}
   0x9   :  { %s1273_s18 = scalar_lea.vmem %s29_s10, 16384  ;;  %p1278_p4 = scmp.lt.s32.totalorder %s29_s10, %s29_s10 }
   0xa   :  { %p1274_p3 = scmp.ne.s32.totalorder %s29_s10, %s1273_s18  ;;  %p1279_p5 = scmp.lt.s32.totalorder %s1273_s18, %s1273_s18 }
   0xc   :  { %p1280_p6 = por %p1279_p5, %p1278_p4 }
   0xe   :  { %p1281_p7 = pnand %p1280_p6, %p1274_p3 }
  0x10   :  { %1284 = shalt.err (!%p1281_p7)
}
  0x11   :  { %s1336_s19 = smov 512   ;;  %s1337_s20 = smov 32  }
  0x12   :  { %34 = dma.hbm_to_vmem [thread:$0]  %s1664_s3, 16384, %s29_s10, [#allocation3], %s1336_s19, %s1336_s19, %s1337_s20  }
  0x13   :  { %s1338_s23 = smov [#allocation5]   ;;  %s1285_s27 = scalar_lea.hbm %s1666_s5, 16384 }
  0x14   :  { %s42_s24 = sshll.u32 %s1338_s23, 4  ;;  %p1286_p8 = scmp.ne.s32.totalorder %s1666_s5, %s1285_s27  ;;  %s43_s24 = int_to_ptr.vmem [resolvable:$true] %s42_s24 }
  0x15   :  { %p1289_p9 = scmp.lt.u32.totalorder %s1285_s27, %s1666_s5 }
  0x17   :  { %p1291_p10 = pnand %p1289_p9, %p1286_p8 }
  0x19   :  { %1294 = shalt.err (!%p1291_p10)
}
  0x1a   :  { %s1295_s12 = scalar_lea.vmem %s43_s24, 16384  ;;  %p1300_p12 = scmp.lt.s32.totalorder %s43_s24, %s43_s24 }
  0x1b   :  { %p1296_p11 = scmp.ne.s32.totalorder %s43_s24, %s1295_s12  ;;  %p1301_p13 = scmp.lt.s32.totalorder %s1295_s12, %s1295_s12 }
  0x1d   :  { %p1302_p0 = por %p1301_p13, %p1300_p12 }
  0x1f   :  { %p1303_p1 = pnand %p1302_p0, %p1296_p11 }
  0x21   :  { %1306 = shalt.err (!%p1303_p1)
}
  0x22   :  { %s1339_s3 = smov 256   ;;  %s1340_s10 = smov 16  }
  0x23   :  { %48 = dma.hbm_to_vmem [thread:$0]  %s1666_s5, 16384, %s43_s24, [#allocation6], %s1339_s3, %s1339_s3, %s1340_s10  }
  0x24   :  { %1329 = dma.done.wait [#allocation3], 16384  }
  0x25   :  { %1330 = vsyncadd [#allocation3], 4294950912 }
  0x26   :  { %1331 = dma.done.wait [#allocation6], 16384  }
  0x27   :  { %1332 = vsyncadd [#allocation6], 4294950912  ;;  %v1341_v0 = vmov 0.0   ;;  %v63_v1 = vld [vmem:[%s1662_s1 + $0x8] sm:$0xff]  ;;  %v65_v2 = vld [vmem:[%s1662_s1 + $0x18] sm:$0xff]  ;;  %vm862_vm0 = vcmask 516096  }
  0x28   :  { %170 = vmatprep.mubr.f32.mxu0 %v1341_v0  ;;  %v62_v3 = vld [vmem:[%s1662_s1] sm:$0xff]  ;;  %v915_v4 = vpack.c.bf16 %v65_v2, %v63_v1  ;;  %v64_v5 = vld [vmem:[%s1662_s1 + $0x10] sm:$0xff]  ;;  %v67_v6 = vld [vmem:[%s1662_s1 + $0x28] sm:$0xff] }
  0x29   :  { %v69_v7 = vld [vmem:[%s1662_s1 + $0x38] sm:$0xff]  ;;  %v917_v8 = vpack.c.bf16 %v64_v5, %v62_v3  ;;  %v66_v10 = vld [vmem:[%s1662_s1 + $0x20] sm:$0xff]  ;;  %v68_v11 = vld [vmem:[%s1662_s1 + $0x30] sm:$0xff] }
  0x2a   :  { %v919_v9 = vpack.c.bf16 %v69_v7, %v67_v6  ;;  %v71_v12 = vld [vmem:[%s1662_s1 + $0x48] sm:$0xff]  ;;  %916 = vmatprep.subr.bf16.mxu0 %v915_v4  ;;  %v73_v13 = vld [vmem:[%s1662_s1 + $0x58] sm:$0xff]  ;;  %v921_v14 = vpack.c.bf16 %v68_v11, %v66_v10  ;;  %v70_v16 = vld [vmem:[%s1662_s1 + $0x40] sm:$0xff] }
  0x2b   :  { %918 = vmatpush1.bf16.msra.mxu0 %v917_v8  ;;  %v923_v15 = vpack.c.bf16 %v73_v13, %v71_v12  ;;  %v72_v17 = vld [vmem:[%s1662_s1 + $0x50] sm:$0xff]  ;;  %v75_v18 = vld [vmem:[%s1662_s1 + $0x68] sm:$0xff]  ;;  %v77_v19 = vld [vmem:[%s1662_s1 + $0x78] sm:$0xff] }
  0x2c   :  { %920 = vmatprep.subr.bf16.mxu0 %v919_v9  ;;  %v925_v20 = vpack.c.bf16 %v72_v17, %v70_v16  ;;  %v927_v21 = vpack.c.bf16 %v77_v19, %v75_v18  ;;  %v74_v22 = vld [vmem:[%s1662_s1 + $0x60] sm:$0xff]  ;;  %v76_v23 = vld [vmem:[%s1662_s1 + $0x70] sm:$0xff]  ;;  %v79_v24 = vld [vmem:[%s1662_s1 + $0x88] sm:$0xff] }
  0x2d   :  { %v81_v25 = vld [vmem:[%s1662_s1 + $0x98] sm:$0xff]  ;;  %v180_v26 = vld [vmem:[#allocation2 + $0x8] sm:$0xff]  ;;  %v929_v28 = vpack.c.bf16 %v76_v23, %v74_v22  ;;  %v179_v30 = vld [vmem:[#allocation2] sm:$0xff] }
  0x2e   :  { %v184_v27 = vld [vmem:[#allocation2 + $0x28] sm:$0xff]  ;;  %v183_v31 = vld [vmem:[#allocation2 + $0x20] sm:$0xff]  ;;  %v931_v32 = vpack.c.bf16 %v81_v25, %v79_v24  ;;  %v80_v34 = vld [vmem:[%s1662_s1 + $0x90] sm:$0xff] }
  0x2f   :  { %922 = vmatpush1.bf16.msra.mxu0 %v921_v14  ;;  %v947_v29 = vpack.c.bf16 %v184_v27, %v180_v26  ;;  %v78_v33 = vld [vmem:[%s1662_s1 + $0x80] sm:$0xff]  ;;  %v949_v35 = vpack.c.bf16 %v183_v31, %v179_v30  ;;  %v188_v36 = vld [vmem:[#allocation2 + $0x48] sm:$0xff]  ;;  %v85_v38 = vld [vmem:[%s1662_s1 + $0xb8] sm:$0xff] }
  0x30   :  { %924 = vmatprep.subr.bf16.mxu0 %v923_v15  ;;  %v83_v37 = vld [vmem:[%s1662_s1 + $0xa8] sm:$0xff]  ;;  %v187_v41 = vld [vmem:[#allocation2 + $0x40] sm:$0xff]  ;;  %v933_v43 = vpack.c.bf16 %v80_v34, %v78_v33  ;;  %v84_v49 = vld [vmem:[%s1662_s1 + $0xb0] sm:$0xff] }
  0x31   :  { %948 = vmatprep.subr.bf16.mxu1 %v947_v29  ;;  %v192_v39 = vld [vmem:[#allocation2 + $0x68] sm:$0xff]  ;;  %v191_v42 = vld [vmem:[#allocation2 + $0x60] sm:$0xff]  ;;  %v935_v47 = vpack.c.bf16 %v85_v38, %v83_v37  ;;  %v89_v53 = vld [vmem:[%s1662_s1 + $0xd8] sm:$0xff] }
  0x32   :  { %950 = vmatpush1.bf16.msra.mxu1 %v949_v35  ;;  %v951_v40 = vpack.c.bf16 %v192_v39, %v188_v36  ;;  %v953_v44 = vpack.c.bf16 %v191_v42, %v187_v41  ;;  %v196_v45 = vld [vmem:[#allocation2 + $0x88] sm:$0xff]  ;;  %v82_v48 = vld [vmem:[%s1662_s1 + $0xa0] sm:$0xff]  ;;  %v88_v0 = vld [vmem:[%s1662_s1 + $0xd0] sm:$0xff] }
  0x33   :  { %926 = vmatpush1.bf16.msra.mxu0 %v925_v20  ;;  %v200_v46 = vld [vmem:[#allocation2 + $0xa8] sm:$0xff]  ;;  %v195_v51 = vld [vmem:[#allocation2 + $0x80] sm:$0xff]  ;;  %v937_v58 = vpack.c.bf16 %v84_v49, %v82_v48  ;;  %v93_v3 = vld [vmem:[%s1662_s1 + $0xf8] sm:$0xff] }
  0x34   :  { %928 = vmatprep.subr.bf16.mxu0 %v927_v21  ;;  %952 = vmatprep.subr.bf16.mxu1 %v951_v40  ;;  %v955_v50 = vpack.c.bf16 %v200_v46, %v196_v45  ;;  %v87_v52 = vld [vmem:[%s1662_s1 + $0xc8] sm:$0xff]  ;;  %v199_v54 = vld [vmem:[#allocation2 + $0xa0] sm:$0xff]  ;;  %v92_v12 = vld [vmem:[%s1662_s1 + $0xf0] sm:$0xff] }
  0x35   :  { %v957_v55 = vpack.c.bf16 %v199_v54, %v195_v51  ;;  %v204_v56 = vld [vmem:[#allocation2 + $0xc8] sm:$0xff]  ;;  %v203_v60 = vld [vmem:[#allocation2 + $0xc0] sm:$0xff]  ;;  %v939_v62 = vpack.c.bf16 %v89_v53, %v87_v52  ;;  %v182_v15 = vld [vmem:[#allocation2 + $0x18] sm:$0xff] }
  0x36   :  { %954 = vmatpush1.bf16.msra.mxu1 %v953_v44  ;;  %v208_v57 = vld [vmem:[#allocation2 + $0xe8] sm:$0xff]  ;;  %v207_v61 = vld [vmem:[#allocation2 + $0xe0] sm:$0xff]  ;;  %v186_v16 = vld [vmem:[#allocation2 + $0x38] sm:$0xff] }
  0x37   :  { %930 = vmatpush1.bf16.msra.mxu0 %v929_v28  ;;  %956 = vmatprep.subr.bf16.mxu1 %v955_v50  ;;  %v959_v59 = vpack.c.bf16 %v208_v57, %v204_v56  ;;  %v86_v63 = vld [vmem:[%s1662_s1 + $0xc0] sm:$0xff]  ;;  %v212_v1 = vld [vmem:[#allocation2 + $0x108] sm:$0xff]  ;;  %v961_v5 = vpack.c.bf16 %v207_v61, %v203_v60  ;;  %v181_v19 = vld [vmem:[#allocation2 + $0x10] sm:$0xff]  ;;  %v1011_v23 = vpack.c.bf16 %v186_v16, %v182_v15 }
  0x38   :  { %932 = vmatprep.subr.bf16.mxu0 %v931_v32  ;;  %v91_v2 = vld [vmem:[%s1662_s1 + $0xe8] sm:$0xff]  ;;  %v941_v6 = vpack.c.bf16 %v88_v0, %v86_v63  ;;  %v90_v7 = vld [vmem:[%s1662_s1 + $0xe0] sm:$0xff]  ;;  %v185_v24 = vld [vmem:[#allocation2 + $0x30] sm:$0xff] }
  0x39   :  { %v216_v4 = vld [vmem:[#allocation2 + $0x128] sm:$0xff]  ;;  %v211_v9 = vld [vmem:[#allocation2 + $0x100] sm:$0xff]  ;;  %v943_v11 = vpack.c.bf16 %v93_v3, %v91_v2  ;;  %v945_v18 = vpack.c.bf16 %v92_v12, %v90_v7  ;;  %v190_v27 = vld [vmem:[#allocation2 + $0x58] sm:$0xff]  ;;  %v1013_v31 = vpack.c.bf16 %v185_v24, %v181_v19 }
  0x3a   :  { %958 = vmatpush1.bf16.msra.mxu1 %v957_v55  ;;  %v963_v8 = vpack.c.bf16 %v216_v4, %v212_v1  ;;  %v215_v10 = vld [vmem:[#allocation2 + $0x120] sm:$0xff]  ;;  %v220_v13 = vld [vmem:[#allocation2 + $0x148] sm:$0xff]  ;;  %v194_v28 = vld [vmem:[#allocation2 + $0x78] sm:$0xff] }
  0x3b   :  { %934 = vmatpush1.bf16.msra.mxu0 %v933_v43  ;;  %960 = vmatprep.subr.bf16.mxu1 %v959_v59  ;;  %v224_v14 = vld [vmem:[#allocation2 + $0x168] sm:$0xff]  ;;  %v965_v17 = vpack.c.bf16 %v215_v10, %v211_v9  ;;  %v219_v21 = vld [vmem:[#allocation2 + $0x140] sm:$0xff]  ;;  %v189_v32 = vld [vmem:[#allocation2 + $0x50] sm:$0xff]  ;;  %v1015_v36 = vpack.c.bf16 %v194_v28, %v190_v27 }
  0x3c   :  { %936 = vmatprep.subr.bf16.mxu0 %v935_v47  ;;  %v967_v20 = vpack.c.bf16 %v224_v14, %v220_v13  ;;  %v223_v22 = vld [vmem:[#allocation2 + $0x160] sm:$0xff]  ;;  %v228_v25 = vld [vmem:[#allocation2 + $0x188] sm:$0xff]  ;;  %v193_v37 = vld [vmem:[#allocation2 + $0x70] sm:$0xff] }
  0x3d   :  { %v232_v26 = vld [vmem:[#allocation2 + $0x1a8] sm:$0xff]  ;;  %v61_v29 = vld [vmem:[%s1661_s0] sm:$0x1]  ;;  %v969_v30 = vpack.c.bf16 %v223_v22, %v219_v21  ;;  %v198_v40 = vld [vmem:[#allocation2 + $0x98] sm:$0xff]  ;;  %v1017_v43 = vpack.c.bf16 %v193_v37, %v189_v32 }
  0x3e   :  { %962 = vmatpush1.bf16.msra.mxu1 %v961_v5  ;;  %v971_v33 = vpack.c.bf16 %v232_v26, %v228_v25  ;;  %v227_v34 = vld [vmem:[#allocation2 + $0x180] sm:$0xff]  ;;  %v236_v38 = vld [vmem:[#allocation2 + $0x1c8] sm:$0xff]  ;;  %v202_v41 = vld [vmem:[#allocation2 + $0xb8] sm:$0xff] }
  0x3f   :  { %938 = vmatpush1.bf16.msra.mxu0 %v937_v58  ;;  %964 = vmatprep.subr.bf16.mxu1 %v963_v8  ;;  %v231_v35 = vld [vmem:[#allocation2 + $0x1a0] sm:$0xff]  ;;  %v240_v39 = vld [vmem:[#allocation2 + $0x1e8] sm:$0xff]  ;;  %v197_v44 = vld [vmem:[#allocation2 + $0x90] sm:$0xff]  ;;  %v1019_v48 = vpack.c.bf16 %v202_v41, %v198_v40 }
  0x40   :  { %940 = vmatprep.subr.bf16.mxu0 %v939_v62  ;;  %v973_v42 = vpack.c.bf16 %v231_v35, %v227_v34  ;;  %v975_v45 = vpack.c.bf16 %v240_v39, %v236_v38  ;;  %v235_v46 = vld [vmem:[#allocation2 + $0x1c0] sm:$0xff]  ;;  %v201_v49 = vld [vmem:[#allocation2 + $0xb0] sm:$0xff]  ;;  %v244_v50 = vld [vmem:[#allocation2 + $0x208] sm:$0xff] }
  0x41   :  { %v239_v47 = vld [vmem:[#allocation2 + $0x1e0] sm:$0xff]  ;;  %v248_v51 = vld [vmem:[#allocation2 + $0x228] sm:$0xff]  ;;  %v206_v52 = vld [vmem:[#allocation2 + $0xd8] sm:$0xff]  ;;  %v1021_v55 = vpack.c.bf16 %v201_v49, %v197_v44 }
  0x42   :  { %966 = vmatpush1.bf16.msra.mxu1 %v965_v17  ;;  %v210_v53 = vld [vmem:[#allocation2 + $0xf8] sm:$0xff]  ;;  %v977_v54 = vpack.c.bf16 %v239_v47, %v235_v46  ;;  %v205_v56 = vld [vmem:[#allocation2 + $0xd0] sm:$0xff]  ;;  %v979_v57 = vpack.c.bf16 %v248_v51, %v244_v50  ;;  %v243_v58 = vld [vmem:[#allocation2 + $0x200] sm:$0xff] }
  0x43   :  { %942 = vmatpush1.bf16.msra.mxu0 %v941_v6  ;;  %968 = vmatprep.subr.bf16.mxu1 %v967_v20  ;;  %v247_v59 = vld [vmem:[#allocation2 + $0x220] sm:$0xff]  ;;  %v1023_v60 = vpack.c.bf16 %v210_v53, %v206_v52  ;;  %v209_v61 = vld [vmem:[#allocation2 + $0xf0] sm:$0xff]  ;;  %v252_v62 = vld [vmem:[#allocation2 + $0x248] sm:$0xff] }
  0x44   :  { %944 = vmatprep.subr.bf16.mxu0 %v943_v11  ;;  %v256_v63 = vld [vmem:[#allocation2 + $0x268] sm:$0xff]  ;;  %v214_v0 = vld [vmem:[#allocation2 + $0x118] sm:$0xff]  ;;  %v981_v2 = vpack.c.bf16 %v247_v59, %v243_v58  ;;  %v1025_v3 = vpack.c.bf16 %v209_v61, %v205_v56  ;;  %v213_v4 = vld [vmem:[#allocation2 + $0x110] sm:$0xff] }
  0x45   :  { %v218_v1 = vld [vmem:[#allocation2 + $0x138] sm:$0xff]  ;;  %v983_v5 = vpack.c.bf16 %v256_v63, %v252_v62  ;;  %v251_v6 = vld [vmem:[#allocation2 + $0x240] sm:$0xff]  ;;  %v217_v9 = vld [vmem:[#allocation2 + $0x130] sm:$0xff] }
  0x46   :  { %970 = vmatpush1.bf16.msra.mxu1 %v969_v30  ;;  %v255_v7 = vld [vmem:[#allocation2 + $0x260] sm:$0xff]  ;;  %v1027_v8 = vpack.c.bf16 %v218_v1, %v214_v0  ;;  %v260_v10 = vld [vmem:[#allocation2 + $0x288] sm:$0xff]  ;;  %v222_v12 = vld [vmem:[#allocation2 + $0x158] sm:$0xff]  ;;  %v1029_v15 = vpack.c.bf16 %v217_v9, %v213_v4 }
  0x47   :  { %946 = vmatpush1.bf16.msra.mxu0 %v945_v18  ;;  %972 = vmatprep.subr.bf16.mxu1 %v971_v33  ;;  %v264_v11 = vld [vmem:[#allocation2 + $0x2a8] sm:$0xff]  ;;  %v226_v13 = vld [vmem:[#allocation2 + $0x178] sm:$0xff]  ;;  %v985_v14 = vpack.c.bf16 %v255_v7, %v251_v6  ;;  %v221_v16 = vld [vmem:[#allocation2 + $0x150] sm:$0xff] }
  0x48   :  { %1012 = vmatprep.subr.bf16.mxu0 %v1011_v23  ;;  %v987_v17 = vpack.c.bf16 %v264_v11, %v260_v10  ;;  %v259_v18 = vld [vmem:[#allocation2 + $0x280] sm:$0xff]  ;;  %v1031_v20 = vpack.c.bf16 %v226_v13, %v222_v12  ;;  %v225_v21 = vld [vmem:[#allocation2 + $0x170] sm:$0xff]  ;;  %v268_v22 = vld [vmem:[#allocation2 + $0x2c8] sm:$0xff] }
  0x49   :  { %v263_v19 = vld [vmem:[#allocation2 + $0x2a0] sm:$0xff]  ;;  %v272_v23 = vld [vmem:[#allocation2 + $0x2e8] sm:$0xff]  ;;  %v230_v24 = vld [vmem:[#allocation2 + $0x198] sm:$0xff]  ;;  %v1033_v27 = vpack.c.bf16 %v225_v21, %v221_v16 }
  0x4a   :  { %171 = vmatmul.mubr.f32.vlgmr.msra.gmra.mrb[0].mxu0 %v61_v29  ;;  %974 = vmatpush1.bf16.msra.mxu1 %v973_v42  ;;  %v234_v25 = vld [vmem:[#allocation2 + $0x1b8] sm:$0xff]  ;;  %v989_v26 = vpack.c.bf16 %v263_v19, %v259_v18  ;;  %v991_v28 = vpack.c.bf16 %v272_v23, %v268_v22  ;;  %v267_v29 = vld [vmem:[#allocation2 + $0x2c0] sm:$0xff]  ;;  %v229_v32 = vld [vmem:[#allocation2 + $0x190] sm:$0xff] }
  0x4b   :  { %1014 = vmatpush1.bf16.msra.mxu0 %v1013_v31  ;;  %976 = vmatprep.subr.bf16.mxu1 %v975_v45  ;;  %v271_v30 = vld [vmem:[#allocation2 + $0x2e0] sm:$0xff]  ;;  %v1035_v31 = vpack.c.bf16 %v234_v25, %v230_v24  ;;  %v233_v33 = vld [vmem:[#allocation2 + $0x1b0] sm:$0xff]  ;;  %v238_v34 = vld [vmem:[#allocation2 + $0x1d8] sm:$0xff] }
  0x4c   :  { %1016 = vmatprep.subr.bf16.mxu0 %v1015_v36  ;;  %v242_v35 = vld [vmem:[#allocation2 + $0x1f8] sm:$0xff]  ;;  %v993_v36 = vpack.c.bf16 %v271_v30, %v267_v29  ;;  %v1037_v37 = vpack.c.bf16 %v233_v33, %v229_v32  ;;  %v237_v39 = vld [vmem:[#allocation2 + $0x1d0] sm:$0xff]  ;;  %v275_v7 = vld [vmem:[#allocation2 + $0x300] sm:$0xff] }
  0x4d   :  { %v1039_v38 = vpack.c.bf16 %v242_v35, %v238_v34  ;;  %v241_v40 = vld [vmem:[#allocation2 + $0x1f0] sm:$0xff]  ;;  %v246_v41 = vld [vmem:[#allocation2 + $0x218] sm:$0xff]  ;;  %v283_v19 = vld [vmem:[#allocation2 + $0x340] sm:$0xff] }
  0x4e   :  { %978 = vmatpush1.bf16.msra.mxu1 %v977_v54  ;;  %v250_v42 = vld [vmem:[#allocation2 + $0x238] sm:$0xff]  ;;  %v245_v45 = vld [vmem:[#allocation2 + $0x210] sm:$0xff]  ;;  %v295_v32 = vld [vmem:[#allocation2 + $0x3a0] sm:$0xff] }
  0x4f   :  { %1018 = vmatpush1.bf16.msra.mxu0 %v1017_v43  ;;  %980 = vmatprep.subr.bf16.mxu1 %v979_v57  ;;  %v1041_v43 = vpack.c.bf16 %v241_v40, %v237_v39  ;;  %v1043_v44 = vpack.c.bf16 %v250_v42, %v246_v41  ;;  %v249_v46 = vld [vmem:[#allocation2 + $0x230] sm:$0xff]  ;;  %v254_v47 = vld [vmem:[#allocation2 + $0x258] sm:$0xff]  ;;  %v304_v39 = vld [vmem:[#allocation2 + $0x3e8] sm:$0xff] }
  0x50   :  { %1020 = vmatprep.subr.bf16.mxu0 %v1019_v48  ;;  %v258_v48 = vld [vmem:[#allocation2 + $0x278] sm:$0xff]  ;;  %v1045_v49 = vpack.c.bf16 %v249_v46, %v245_v45  ;;  %v253_v51 = vld [vmem:[#allocation2 + $0x250] sm:$0xff]  ;;  %v303_v45 = vld [vmem:[#allocation2 + $0x3e0] sm:$0xff] }
  0x51   :  { %v1047_v50 = vpack.c.bf16 %v258_v48, %v254_v47  ;;  %v257_v52 = vld [vmem:[#allocation2 + $0x270] sm:$0xff]  ;;  %v262_v53 = vld [vmem:[#allocation2 + $0x298] sm:$0xff] }
  0x52   :  { %982 = vmatpush1.bf16.msra.mxu1 %v981_v2  ;;  %v266_v54 = vld [vmem:[#allocation2 + $0x2b8] sm:$0xff]  ;;  %v261_v57 = vld [vmem:[#allocation2 + $0x290] sm:$0xff]  ;;  %v276_v2 = vld [vmem:[#allocation2 + $0x308] sm:$0xff] }
  0x53   :  { %1022 = vmatpush1.bf16.msra.mxu0 %v1021_v55  ;;  %984 = vmatprep.subr.bf16.mxu1 %v983_v5  ;;  %v1049_v55 = vpack.c.bf16 %v257_v52, %v253_v51  ;;  %v1051_v56 = vpack.c.bf16 %v266_v54, %v262_v53  ;;  %v265_v58 = vld [vmem:[#allocation2 + $0x2b0] sm:$0xff]  ;;  %v270_v59 = vld [vmem:[#allocation2 + $0x2d8] sm:$0xff]  ;;  %v96_v53 = vlaneseq }
  0x54   :  { %1024 = vmatprep.subr.bf16.mxu0 %v1023_v60  ;;  %v274_v60 = vld [vmem:[#allocation2 + $0x2f8] sm:$0xff]  ;;  %v1053_v61 = vpack.c.bf16 %v265_v58, %v261_v57  ;;  %v269_v63 = vld [vmem:[#allocation2 + $0x2d0] sm:$0xff] }
  0x55   :  { %v1055_v62 = vpack.c.bf16 %v274_v60, %v270_v59  ;;  %v273_v0 = vld [vmem:[#allocation2 + $0x2f0] sm:$0xff]  ;;  %v278_v4 = vld [vmem:[#allocation2 + $0x318] sm:$0xff]  ;;  %v1516_v54 = vshrl.u32 %v96_v53, 7 }
  0x56   :  { %986 = vmatpush1.bf16.msra.mxu1 %v985_v14  ;;  %v1057_v1 = vpack.c.bf16 %v273_v0, %v269_v63  ;;  %v282_v6 = vld [vmem:[#allocation2 + $0x338] sm:$0xff]  ;;  %v277_v11 = vld [vmem:[#allocation2 + $0x310] sm:$0xff]  ;;  %v284_v14 = vld [vmem:[#allocation2 + $0x348] sm:$0xff] }
  0x57   :  { %1026 = vmatpush1.bf16.msra.mxu0 %v1025_v3  ;;  %988 = vmatprep.subr.bf16.mxu1 %v987_v17  ;;  %v280_v3 = vld [vmem:[#allocation2 + $0x328] sm:$0xff]  ;;  %v1059_v9 = vpack.c.bf16 %v282_v6, %v278_v4  ;;  %v281_v12 = vld [vmem:[#allocation2 + $0x330] sm:$0xff]  ;;  %v286_v16 = vld [vmem:[#allocation2 + $0x358] sm:$0xff]  ;;  %v1525_v57 = vsub.s32 1, %v1516_v54 }
  0x58   :  { %1028 = vmatprep.subr.bf16.mxu0 %v1027_v8  ;;  %v995_v5 = vpack.c.bf16 %v280_v3, %v276_v2  ;;  %v279_v8 = vld [vmem:[#allocation2 + $0x320] sm:$0xff]  ;;  %v1061_v13 = vpack.c.bf16 %v281_v12, %v277_v11  ;;  %v290_v18 = vld [vmem:[#allocation2 + $0x378] sm:$0xff]  ;;  %v285_v23 = vld [vmem:[#allocation2 + $0x350] sm:$0xff] }
  0x59   :  { %v997_v10 = vpack.c.bf16 %v279_v8, %v275_v7  ;;  %v1063_v21 = vpack.c.bf16 %v290_v18, %v286_v16  ;;  %v289_v24 = vld [vmem:[#allocation2 + $0x370] sm:$0xff]  ;;  %v298_v30 = vld [vmem:[#allocation2 + $0x3b8] sm:$0xff]  ;;  %v475_v0 = vld [vmem:[#allocation5] sm:$0xff] }
  0x5a   :  { %990 = vmatpush1.bf16.msra.mxu1 %v989_v26  ;;  %v1065_v25 = vpack.c.bf16 %v289_v24, %v285_v23  ;;  %v292_v26 = vld [vmem:[#allocation2 + $0x388] sm:$0xff]  ;;  %v293_v35 = vld [vmem:[#allocation2 + $0x390] sm:$0xff]  ;;  %v302_v40 = vld [vmem:[#allocation2 + $0x3d8] sm:$0xff] }
  0x5b   :  { %1030 = vmatpush1.bf16.msra.mxu0 %v1029_v15  ;;  %992 = vmatprep.subr.bf16.mxu1 %v991_v28  ;;  %v288_v15 = vld [vmem:[#allocation2 + $0x368] sm:$0xff]  ;;  %v294_v28 = vld [vmem:[#allocation2 + $0x398] sm:$0xff]  ;;  %v301_v46 = vld [vmem:[#allocation2 + $0x3d0] sm:$0xff] }
  0x5c   :  { %1032 = vmatprep.subr.bf16.mxu0 %v1031_v20  ;;  %v999_v17 = vpack.c.bf16 %v288_v15, %v284_v14  ;;  %v287_v20 = vld [vmem:[#allocation2 + $0x360] sm:$0xff]  ;;  %v1067_v33 = vpack.c.bf16 %v298_v30, %v294_v28  ;;  %v306_v41 = vld [vmem:[#allocation2 + $0x3f8] sm:$0xff]  ;;  %v305_v48 = vld [vmem:[#allocation2 + $0x3f0] sm:$0xff] }
  0x5d   :  { %v1001_v22 = vpack.c.bf16 %v287_v20, %v283_v19  ;;  %v478_v51 = vld [vmem:[#allocation5 + $0x18] sm:$0xff]  ;;  %v480_v2 = vld [vmem:[#allocation5 + $0x28] sm:$0xff]  ;;  %v479_v7 = vld [vmem:[#allocation5 + $0x20] sm:$0xff] }
  0x5e   :  { %994 = vmatpush1.bf16.msra.mxu1 %v993_v36  ;;  %v297_v36 = vld [vmem:[#allocation2 + $0x3b0] sm:$0xff]  ;;  %v482_v3 = vld [vmem:[#allocation5 + $0x38] sm:$0xff]  ;;  %v483_v14 = vld [vmem:[#allocation5 + $0x40] sm:$0xff] }
  0x5f   :  { %1034 = vmatpush1.bf16.msra.mxu0 %v1033_v27  ;;  %996 = vmatprep.subr.bf16.mxu1 %v995_v5  ;;  %v296_v27 = vld [vmem:[#allocation2 + $0x3a8] sm:$0xff]  ;;  %v1079_v6 = vpack.c.bf16 %v482_v3, %v480_v2  ;;  %v481_v8 = vld [vmem:[#allocation5 + $0x30] sm:$0xff]  ;;  %v486_v11 = vld [vmem:[#allocation5 + $0x58] sm:$0xff] }
  0x60   :  { %1036 = vmatprep.subr.bf16.mxu0 %v1035_v31  ;;  %v1003_v29 = vpack.c.bf16 %v296_v27, %v292_v26  ;;  %v291_v31 = vld [vmem:[#allocation2 + $0x380] sm:$0xff]  ;;  %v1081_v12 = vpack.c.bf16 %v481_v8, %v479_v7  ;;  %v485_v15 = vld [vmem:[#allocation5 + $0x50] sm:$0xff]  ;;  %v488_v16 = vld [vmem:[#allocation5 + $0x68] sm:$0xff] }
  0x61   :  { %v1005_v34 = vpack.c.bf16 %v295_v32, %v291_v31  ;;  %v1085_v18 = vpack.c.bf16 %v485_v15, %v483_v14  ;;  %v487_v20 = vld [vmem:[#allocation5 + $0x60] sm:$0xff]  ;;  %v494_v23 = vld [vmem:[#allocation5 + $0x98] sm:$0xff]  ;;  %v493_v27 = vld [vmem:[#allocation5 + $0x90] sm:$0xff] }
  0x62   :  { %998 = vmatpush1.bf16.msra.mxu1 %v997_v10  ;;  %v484_v10 = vld [vmem:[#allocation5 + $0x48] sm:$0xff]  ;;  %v491_v26 = vld [vmem:[#allocation5 + $0x80] sm:$0xff]  ;;  %v514_v53 = vld [vmem:[#allocation5 + $0x138] sm:$0xff] }
  0x63   :  { %1038 = vmatpush1.bf16.msra.mxu0 %v1037_v37  ;;  %1000 = vmatprep.subr.bf16.mxu1 %v999_v17  ;;  %v300_v37 = vld [vmem:[#allocation2 + $0x3c8] sm:$0xff]  ;;  %v490_v17 = vld [vmem:[#allocation5 + $0x78] sm:$0xff]  ;;  %v1093_v30 = vpack.c.bf16 %v493_v27, %v491_v26  ;;  %v495_v32 = vld [vmem:[#allocation5 + $0xa0] sm:$0xff] }
  0x64   :  { %1040 = vmatprep.subr.bf16.mxu0 %v1039_v38  ;;  %v1069_v38 = vpack.c.bf16 %v297_v36, %v293_v35  ;;  %v1007_v42 = vpack.c.bf16 %v304_v39, %v300_v37  ;;  %v1087_v19 = vpack.c.bf16 %v490_v17, %v488_v16  ;;  %v496_v28 = vld [vmem:[#allocation5 + $0xa8] sm:$0xff]  ;;  %v502_v35 = vld [vmem:[#allocation5 + $0xd8] sm:$0xff]  ;;  %v501_v39 = vld [vmem:[#allocation5 + $0xd0] sm:$0xff] }
  0x65   :  { %v517_v2 = vld [vmem:[#allocation5 + $0x150] sm:$0xff]  ;;  %v520_v3 = vld [vmem:[#allocation5 + $0x168] sm:$0xff]  ;;  %v519_v7 = vld [vmem:[#allocation5 + $0x160] sm:$0xff] }
  0x66   :  { %1002 = vmatpush1.bf16.msra.mxu1 %v1001_v22  ;;  %v492_v22 = vld [vmem:[#allocation5 + $0x88] sm:$0xff]  ;;  %v521_v8 = vld [vmem:[#allocation5 + $0x170] sm:$0xff]  ;;  %v530_v17 = vld [vmem:[#allocation5 + $0x1b8] sm:$0xff] }
  0x67   :  { %1042 = vmatpush1.bf16.msra.mxu0 %v1041_v43  ;;  %1004 = vmatprep.subr.bf16.mxu1 %v1003_v29  ;;  %v1071_v43 = vpack.c.bf16 %v306_v41, %v302_v40  ;;  %v498_v29 = vld [vmem:[#allocation5 + $0xb8] sm:$0xff]  ;;  %v504_v40 = vld [vmem:[#allocation5 + $0xe8] sm:$0xff]  ;;  %v525_v14 = vld [vmem:[#allocation5 + $0x190] sm:$0xff] }
  0x68   :  { %1044 = vmatprep.subr.bf16.mxu0 %v1043_v44  ;;  %v299_v44 = vld [vmem:[#allocation2 + $0x3c0] sm:$0xff]  ;;  %v1095_v31 = vpack.c.bf16 %v498_v29, %v496_v28  ;;  %v506_v41 = vld [vmem:[#allocation5 + $0xf8] sm:$0xff]  ;;  %v528_v16 = vld [vmem:[#allocation5 + $0x1a8] sm:$0xff] }
  0x69   :  { %v1009_v47 = vpack.c.bf16 %v303_v45, %v299_v44  ;;  %v503_v44 = vld [vmem:[#allocation5 + $0xe0] sm:$0xff]  ;;  %v505_v45 = vld [vmem:[#allocation5 + $0xf0] sm:$0xff]  ;;  %v536_v27 = vld [vmem:[#allocation5 + $0x1e8] sm:$0xff] }
  0x6a   :  { %1006 = vmatpush1.bf16.msra.mxu1 %v1005_v34  ;;  %v500_v34 = vld [vmem:[#allocation5 + $0xc8] sm:$0xff]  ;;  %v533_v26 = vld [vmem:[#allocation5 + $0x1d0] sm:$0xff]  ;;  %v538_v28 = vld [vmem:[#allocation5 + $0x1f8] sm:$0xff] }
  0x6b   :  { %1046 = vmatpush1.bf16.msra.mxu0 %v1045_v49  ;;  %1008 = vmatprep.subr.bf16.mxu1 %v1007_v42  ;;  %v1073_v49 = vpack.c.bf16 %v305_v48, %v301_v46  ;;  %v1099_v37 = vpack.c.bf16 %v502_v35, %v500_v34  ;;  %v508_v46 = vld [vmem:[#allocation5 + $0x108] sm:$0xff]  ;;  %v1105_v48 = vpack.c.bf16 %v505_v45, %v503_v44  ;;  %v542_v35 = vld [vmem:[#allocation5 + $0x218] sm:$0xff] }
  0x6c   :  { %1048 = vmatprep.subr.bf16.mxu0 %v1047_v50  ;;  %v476_v50 = vld [vmem:[#allocation5 + $0x8] sm:$0xff] }
  0x6d   :  { %v1075_v52 = vpack.c.bf16 %v478_v51, %v476_v50  ;;  %v507_v50 = vld [vmem:[#allocation5 + $0x100] sm:$0xff]  ;;  %v509_v51 = vld [vmem:[#allocation5 + $0x110] sm:$0xff]  ;;  %v540_v34 = vld [vmem:[#allocation5 + $0x208] sm:$0xff] }
  0x6e   :  { %1010 = vmatpush1.bf16.msra.mxu1 %v1009_v47  ;;  %v510_v47 = vld [vmem:[#allocation5 + $0x118] sm:$0xff] }
  0x6f   :  { %1050 = vmatpush1.bf16.msra.mxu0 %v1049_v55  ;;  %1076 = vmatprep.subr.bf16.mxu1 %v1075_v52  ;;  %v1519_v55 = vsub.s32 0, %v1516_v54  ;;  %v512_v52 = vld [vmem:[#allocation5 + $0x128] sm:$0xff] }
  0x70   :  { %1052 = vmatprep.subr.bf16.mxu0 %v1051_v56  ;;  %v94_v56 = vld [vmem:[%s1663_s2] sm:$0x3] }
  0x71   :  { %v99_v58 = vrot.slane %v94_v56, %v1519_v55  ;;  %v103_v59 = vrot.slane %v94_v56, %v1525_v57  ;;  %v1109_v56 = vpack.c.bf16 %v509_v51, %v507_v50 }
  0x73   :  { %1054 = vmatpush1.bf16.msra.mxu0 %v1053_v61 }
  0x74   :  { %1056 = vmatprep.subr.bf16.mxu0 %v1055_v62 }
  0x77   :  { %1058 = vmatpush1.bf16.msra.mxu0 %v1057_v1  ;;  %v477_v1 = vld [vmem:[#allocation5 + $0x10] sm:$0xff] }
  0x78   :  { %1060 = vmatprep.subr.bf16.mxu0 %v1059_v9  ;;  %v1077_v4 = vpack.c.bf16 %v477_v1, %v475_v0  ;;  %v515_v1 = vld [vmem:[#allocation5 + $0x140] sm:$0xff] }
  0x7b   :  { %1062 = vmatpush1.bf16.msra.mxu0 %v1061_v13  ;;  %v1083_v13 = vpack.c.bf16 %v486_v11, %v484_v10  ;;  %v526_v10 = vld [vmem:[#allocation5 + $0x198] sm:$0xff]  ;;  %v1121_v11 = vpack.c.bf16 %v521_v8, %v519_v7 }
  0x7c   :  { %1064 = vmatprep.subr.bf16.mxu0 %v1063_v21  ;;  %v489_v21 = vld [vmem:[#allocation5 + $0x70] sm:$0xff] }
  0x7d   :  { %v1089_v24 = vpack.c.bf16 %v489_v21, %v487_v20  ;;  %v529_v20 = vld [vmem:[#allocation5 + $0x1b0] sm:$0xff] }
  0x7f   :  { %1066 = vmatpush1.bf16.msra.mxu0 %v1065_v25  ;;  %v1091_v25 = vpack.c.bf16 %v494_v23, %v492_v22  ;;  %v532_v22 = vld [vmem:[#allocation5 + $0x1c8] sm:$0xff]  ;;  %v534_v23 = vld [vmem:[#allocation5 + $0x1d8] sm:$0xff] }
  0x80   :  { %1068 = vmatprep.subr.bf16.mxu0 %v1067_v33  ;;  %v497_v33 = vld [vmem:[#allocation5 + $0xb0] sm:$0xff] }
  0x81   :  { %v1097_v36 = vpack.c.bf16 %v497_v33, %v495_v32  ;;  %v537_v32 = vld [vmem:[#allocation5 + $0x1f0] sm:$0xff] }
  0x83   :  { %1070 = vmatpush1.bf16.msra.mxu0 %v1069_v38  ;;  %v499_v38 = vld [vmem:[#allocation5 + $0xc0] sm:$0xff] }
  0x84   :  { %1072 = vmatprep.subr.bf16.mxu0 %v1071_v43  ;;  %v1101_v42 = vpack.c.bf16 %v501_v39, %v499_v38  ;;  %v1103_v43 = vpack.c.bf16 %v506_v41, %v504_v40  ;;  %v776_v38 = vld [vmem:[%s1668_s7 + $0x88] sm:$0xff]  ;;  %v759_v39 = vld [vmem:[%s1668_s7] sm:$0xff] }
  0x85   :  { %v760_v41 = vld [vmem:[%s1668_s7 + $0x8] sm:$0xff] }
  0x86   :  { %v1205_v44 = vpack.c.bf16 %v760_v41, %v759_v39  ;;  %v555_v39 = vld [vmem:[#allocation5 + $0x280] sm:$0xff]  ;;  %v560_v41 = vld [vmem:[#allocation5 + $0x2a8] sm:$0xff] }
  0x87   :  { %1074 = vmatpush1.bf16.msra.mxu0 %v1073_v49  ;;  %v1107_v49 = vpack.c.bf16 %v510_v47, %v508_v46  ;;  %v761_v46 = vld [vmem:[%s1668_s7 + $0x10] sm:$0xff]  ;;  %v762_v47 = vld [vmem:[%s1668_s7 + $0x18] sm:$0xff] }
  0x88   :  { %v1209_v50 = vpack.c.bf16 %v762_v47, %v761_v46  ;;  %v561_v46 = vld [vmem:[#allocation5 + $0x2b0] sm:$0xff]  ;;  %v564_v47 = vld [vmem:[#allocation5 + $0x2c8] sm:$0xff] }
 0x11d   :  { %v172_v60 = vpop.f32.mrb[0].mxu0 }
 0x11e   :  { %v173_v61 = vadd.f32 %v172_v60, %v99_v58  ;;  %v174_v62 = vpop.f32.mrb[1].mxu0  ;;  %v1111_v58 = vpack.c.bf16 %v514_v53, %v512_v52  ;;  %v513_v60 = vld [vmem:[#allocation5 + $0x130] sm:$0xff]  ;;  %v763_v52 = vld [vmem:[%s1668_s7 + $0x20] sm:$0xff]  ;;  %v764_v53 = vld [vmem:[%s1668_s7 + $0x28] sm:$0xff] }
 0x11f   :  { %v175_v63 = vadd.f32 %v174_v62, %v103_v59  ;;  %v511_v59 = vld [vmem:[#allocation5 + $0x120] sm:$0xff]  ;;  %v518_v62 = vld [vmem:[#allocation5 + $0x158] sm:$0xff] }
 0x121   :  { %1247 = vtanh.f32 %v175_v63  ;;  %v1113_v63 = vpack.c.bf16 %v513_v60, %v511_v59  ;;  %v1213_v59 = vpack.c.bf16 %v764_v53, %v763_v52  ;;  %v565_v52 = vld [vmem:[#allocation5 + $0x2d0] sm:$0xff]  ;;  %v568_v53 = vld [vmem:[#allocation5 + $0x2e8] sm:$0xff] }
 0x122   :  { %1249 = vtanh.f32 %v173_v61  ;;  %v516_v61 = vld [vmem:[#allocation5 + $0x148] sm:$0xff] }
 0x123   :  { %v1115_v0 = vpack.c.bf16 %v518_v62, %v516_v61  ;;  %v765_v61 = vld [vmem:[%s1668_s7 + $0x30] sm:$0xff]  ;;  %v766_v62 = vld [vmem:[%s1668_s7 + $0x38] sm:$0xff] }
 0x12b   :  { %v1248_v5 = vpop.eup %1247 }
 0x12c   :  { %v1250_v9 = vpop.eup %1249  ;;  %393 = vmatprep.mubr.f32.mxu1 %v1248_v5  ;;  %464 = vmatprep.mubr.f32.mxu0 %v1248_v5  ;;  %v1117_v5 = vpack.c.bf16 %v517_v2, %v515_v1  ;;  %v323_v1 = vsub.s32 3, %v1516_v54 }
 0x12d   :  { %394 = vmatmul.mubr.f32.vlgmr.msra.gmra.mrb[0].mxu1 %v1250_v9  ;;  %465 = vmatmul.mubr.f32.vlgmr.msra.gmra.mrb[2].mxu0 %v1250_v9  ;;  %v524_v9 = vld [vmem:[#allocation5 + $0x188] sm:$0xff] }
 0x12e   :  { %1078 = vmatpush1.bf16.msra.mxu1 %v1077_v4  ;;  %v522_v4 = vld [vmem:[#allocation5 + $0x178] sm:$0xff] }
 0x12f   :  { %1080 = vmatprep.subr.bf16.mxu1 %v1079_v6  ;;  %v1119_v6 = vpack.c.bf16 %v522_v4, %v520_v3 }
 0x132   :  { %1082 = vmatpush1.bf16.msra.mxu1 %v1081_v12  ;;  %v1123_v12 = vpack.c.bf16 %v526_v10, %v524_v9 }
 0x133   :  { %1084 = vmatprep.subr.bf16.mxu1 %v1083_v13  ;;  %v523_v13 = vld [vmem:[#allocation5 + $0x180] sm:$0xff] }
 0x134   :  { %v1125_v15 = vpack.c.bf16 %v525_v14, %v523_v13  ;;  %v541_v13 = vld [vmem:[#allocation5 + $0x210] sm:$0xff]  ;;  %v544_v14 = vld [vmem:[#allocation5 + $0x228] sm:$0xff] }
 0x136   :  { %1086 = vmatpush1.bf16.msra.mxu1 %v1085_v18  ;;  %v1127_v18 = vpack.c.bf16 %v530_v17, %v528_v16 }
 0x137   :  { %1088 = vmatprep.subr.bf16.mxu1 %v1087_v19  ;;  %v527_v19 = vld [vmem:[#allocation5 + $0x1a0] sm:$0xff] }
 0x138   :  { %v1129_v21 = vpack.c.bf16 %v529_v20, %v527_v19  ;;  %v543_v19 = vld [vmem:[#allocation5 + $0x220] sm:$0xff]  ;;  %v545_v20 = vld [vmem:[#allocation5 + $0x230] sm:$0xff] }
 0x13a   :  { %1090 = vmatpush1.bf16.msra.mxu1 %v1089_v24  ;;  %v531_v24 = vld [vmem:[#allocation5 + $0x1c0] sm:$0xff] }
 0x13b   :  { %1092 = vmatprep.subr.bf16.mxu1 %v1091_v25  ;;  %v1131_v25 = vpack.c.bf16 %v534_v23, %v532_v22  ;;  %v1133_v29 = vpack.c.bf16 %v533_v26, %v531_v24  ;;  %v548_v22 = vld [vmem:[#allocation5 + $0x248] sm:$0xff]  ;;  %v550_v23 = vld [vmem:[#allocation5 + $0x258] sm:$0xff] }
 0x13c   :  { %v1147_v26 = vpack.c.bf16 %v550_v23, %v548_v22  ;;  %v583_v22 = vld [vmem:[#allocation5 + $0x360] sm:$0xff]  ;;  %v585_v23 = vld [vmem:[#allocation5 + $0x370] sm:$0xff] }
 0x13e   :  { %1094 = vmatpush1.bf16.msra.mxu1 %v1093_v30  ;;  %v1135_v30 = vpack.c.bf16 %v538_v28, %v536_v27  ;;  %v547_v27 = vld [vmem:[#allocation5 + $0x240] sm:$0xff]  ;;  %v549_v28 = vld [vmem:[#allocation5 + $0x250] sm:$0xff] }
 0x13f   :  { %1096 = vmatprep.subr.bf16.mxu1 %v1095_v31  ;;  %v535_v31 = vld [vmem:[#allocation5 + $0x1e0] sm:$0xff] }
 0x140   :  { %v1137_v33 = vpack.c.bf16 %v537_v32, %v535_v31  ;;  %v1149_v31 = vpack.c.bf16 %v549_v28, %v547_v27  ;;  %v1185_v27 = vpack.c.bf16 %v585_v23, %v583_v22 }
 0x142   :  { %1098 = vmatpush1.bf16.msra.mxu1 %v1097_v36  ;;  %v1139_v36 = vpack.c.bf16 %v542_v35, %v540_v34  ;;  %v553_v34 = vld [vmem:[#allocation5 + $0x270] sm:$0xff]  ;;  %v556_v35 = vld [vmem:[#allocation5 + $0x288] sm:$0xff] }
 0x143   :  { %1100 = vmatprep.subr.bf16.mxu1 %v1099_v37  ;;  %v775_v37 = vld [vmem:[%s1668_s7 + $0x80] sm:$0xff] }
 0x144   :  { %v1203_v40 = vpack.c.bf16 %v776_v38, %v775_v37 }
 0x146   :  { %1102 = vmatpush1.bf16.msra.mxu1 %v1101_v42  ;;  %v777_v42 = vld [vmem:[%s1668_s7 + $0x90] sm:$0xff]  ;;  %1204 = vmatprep.subr.bf16.mxu0 %v1203_v40 }
 0x147   :  { %1104 = vmatprep.subr.bf16.mxu1 %v1103_v43  ;;  %v778_v43 = vld [vmem:[%s1668_s7 + $0x98] sm:$0xff]  ;;  %1206 = vmatpush3.bf16.msra.mxu0 %v1205_v44  ;;  %v557_v40 = vld [vmem:[#allocation5 + $0x290] sm:$0xff] }
 0x148   :  { %v1207_v45 = vpack.c.bf16 %v778_v43, %v777_v42  ;;  %v562_v42 = vld [vmem:[#allocation5 + $0x2b8] sm:$0xff]  ;;  %v1157_v43 = vpack.c.bf16 %v557_v40, %v555_v39 }
 0x149   :  { %v1159_v44 = vpack.c.bf16 %v562_v42, %v560_v41  ;;  %v598_v39 = vld [vmem:[#allocation5 + $0x3d8] sm:$0xff]  ;;  %v595_v42 = vld [vmem:[#allocation5 + $0x3c0] sm:$0xff] }
 0x14a   :  { %1106 = vmatpush1.bf16.msra.mxu1 %v1105_v48  ;;  %v779_v48 = vld [vmem:[%s1668_s7 + $0xa0] sm:$0xff]  ;;  %1208 = vmatprep.subr.bf16.mxu0 %v1207_v45 }
 0x14b   :  { %1108 = vmatprep.subr.bf16.mxu1 %v1107_v49  ;;  %v780_v49 = vld [vmem:[%s1668_s7 + $0xa8] sm:$0xff]  ;;  %1210 = vmatpush3.bf16.msra.mxu0 %v1209_v50  ;;  %v559_v45 = vld [vmem:[#allocation5 + $0x2a0] sm:$0xff] }
 0x14c   :  { %v1211_v51 = vpack.c.bf16 %v780_v49, %v779_v48  ;;  %v566_v48 = vld [vmem:[#allocation5 + $0x2d8] sm:$0xff]  ;;  %v1161_v49 = vpack.c.bf16 %v561_v46, %v559_v45 }
 0x14d   :  { %v1163_v50 = vpack.c.bf16 %v566_v48, %v564_v47  ;;  %v602_v45 = vld [vmem:[#allocation5 + $0x3f8] sm:$0xff]  ;;  %v599_v47 = vld [vmem:[#allocation5 + $0x3e0] sm:$0xff]  ;;  %v601_v48 = vld [vmem:[#allocation5 + $0x3f0] sm:$0xff] }
 0x14e   :  { %1110 = vmatpush1.bf16.msra.mxu1 %v1109_v56  ;;  %v781_v56 = vld [vmem:[%s1668_s7 + $0xb0] sm:$0xff]  ;;  %1212 = vmatprep.subr.bf16.mxu0 %v1211_v51  ;;  %v563_v51 = vld [vmem:[#allocation5 + $0x2c0] sm:$0xff] }
 0x14f   :  { %1112 = vmatprep.subr.bf16.mxu1 %v1111_v58  ;;  %v782_v58 = vld [vmem:[%s1668_s7 + $0xb8] sm:$0xff]  ;;  %1214 = vmatpush3.bf16.msra.mxu0 %v1213_v59 }
 0x150   :  { %v1215_v60 = vpack.c.bf16 %v782_v58, %v781_v56  ;;  %v570_v56 = vld [vmem:[#allocation5 + $0x2f8] sm:$0xff]  ;;  %v1165_v58 = vpack.c.bf16 %v565_v52, %v563_v51  ;;  %v784_v51 = vld [vmem:[%s1668_s7 + $0xc8] sm:$0xff] }
 0x151   :  { %v1167_v59 = vpack.c.bf16 %v570_v56, %v568_v53  ;;  %v767_v53 = vld [vmem:[%s1668_s7 + $0x40] sm:$0xff]  ;;  %v768_v56 = vld [vmem:[%s1668_s7 + $0x48] sm:$0xff] }
 0x152   :  { %1114 = vmatpush1.bf16.msra.mxu1 %v1113_v63  ;;  %v1217_v63 = vpack.c.bf16 %v766_v62, %v765_v61  ;;  %1216 = vmatprep.subr.bf16.mxu0 %v1215_v60  ;;  %v567_v60 = vld [vmem:[#allocation5 + $0x2e0] sm:$0xff]  ;;  %v569_v61 = vld [vmem:[#allocation5 + $0x2f0] sm:$0xff]  ;;  %v572_v62 = vld [vmem:[#allocation5 + $0x308] sm:$0xff] }
 0x153   :  { %1116 = vmatprep.subr.bf16.mxu1 %v1115_v0  ;;  %v1580_v0 = vld [vmem:[%s1665_s4] sm:$0xf] }
 0x154   :  { %1218 = vmatpush3.bf16.msra.mxu0 %v1217_v63  ;;  %v312_v2 = vrot.slane %v1580_v0, %v1519_v55  ;;  %v316_v3 = vrot.slane %v1580_v0, %v1525_v57  ;;  %v324_v4 = vrot.slane %v1580_v0, %v323_v1  ;;  %v574_v63 = vld [vmem:[#allocation5 + $0x318] sm:$0xff]  ;;  %v1169_v1 = vpack.c.bf16 %v569_v61, %v567_v60 }
 0x155   :  { %v786_v60 = vld [vmem:[%s1668_s7 + $0xd8] sm:$0xff] }
 0x156   :  { %1118 = vmatpush1.bf16.msra.mxu1 %v1117_v5 }
 0x157   :  { %1120 = vmatprep.subr.bf16.mxu1 %v1119_v6 }
 0x15a   :  { %1122 = vmatpush1.bf16.msra.mxu1 %v1121_v11 }
 0x15b   :  { %1124 = vmatprep.subr.bf16.mxu1 %v1123_v12  ;;  %v539_v12 = vld [vmem:[#allocation5 + $0x200] sm:$0xff] }
 0x15c   :  { %v1141_v16 = vpack.c.bf16 %v541_v13, %v539_v12  ;;  %v580_v12 = vld [vmem:[#allocation5 + $0x348] sm:$0xff]  ;;  %v582_v13 = vld [vmem:[#allocation5 + $0x358] sm:$0xff] }
 0x15e   :  { %1126 = vmatpush1.bf16.msra.mxu1 %v1125_v15  ;;  %v546_v15 = vld [vmem:[#allocation5 + $0x238] sm:$0xff] }
 0x15f   :  { %1128 = vmatprep.subr.bf16.mxu1 %v1127_v18  ;;  %v1143_v18 = vpack.c.bf16 %v546_v15, %v544_v14  ;;  %v1179_v15 = vpack.c.bf16 %v582_v13, %v580_v12  ;;  %v773_v12 = vld [vmem:[%s1668_s7 + $0x70] sm:$0xff]  ;;  %v774_v13 = vld [vmem:[%s1668_s7 + $0x78] sm:$0xff] }
 0x162   :  { %1130 = vmatpush1.bf16.msra.mxu1 %v1129_v21 }
 0x163   :  { %1132 = vmatprep.subr.bf16.mxu1 %v1131_v25  ;;  %v1145_v25 = vpack.c.bf16 %v545_v20, %v543_v19  ;;  %v586_v19 = vld [vmem:[#allocation5 + $0x378] sm:$0xff] }
 0x166   :  { %1134 = vmatpush1.bf16.msra.mxu1 %v1133_v29  ;;  %v552_v29 = vld [vmem:[#allocation5 + $0x268] sm:$0xff] }
 0x167   :  { %1136 = vmatprep.subr.bf16.mxu1 %v1135_v30  ;;  %v554_v30 = vld [vmem:[#allocation5 + $0x278] sm:$0xff] }
 0x168   :  { %v1151_v32 = vpack.c.bf16 %v554_v30, %v552_v29  ;;  %v587_v29 = vld [vmem:[#allocation5 + $0x380] sm:$0xff]  ;;  %v589_v30 = vld [vmem:[#allocation5 + $0x390] sm:$0xff] }
 0x16a   :  { %1138 = vmatpush1.bf16.msra.mxu1 %v1137_v33  ;;  %v551_v33 = vld [vmem:[#allocation5 + $0x260] sm:$0xff] }
 0x16b   :  { %1140 = vmatprep.subr.bf16.mxu1 %v1139_v36  ;;  %v558_v36 = vld [vmem:[#allocation5 + $0x298] sm:$0xff]  ;;  %v1153_v37 = vpack.c.bf16 %v553_v34, %v551_v33  ;;  %v1189_v34 = vpack.c.bf16 %v589_v30, %v587_v29 }
 0x16c   :  { %v1155_v38 = vpack.c.bf16 %v558_v36, %v556_v35  ;;  %v591_v36 = vld [vmem:[#allocation5 + $0x3a0] sm:$0xff] }
 0x200   :  { %v395_v5 = vpop.f32.mrb[0].mxu1  ;;  %v1588_v6 = vpop.f32.mrb[2].mxu0 }
 0x201   :  { %v397_v7 = vpop.f32.mrb[1].mxu1  ;;  %v468_v8 = vpop.f32.mrb[3].mxu0  ;;  %v396_v9 = vadd.f32 %v395_v5, %v312_v2  ;;  %v1171_v2 = vpack.c.bf16 %v574_v63, %v572_v62  ;;  %v576_v5 = vld [vmem:[#allocation5 + $0x328] sm:$0xff]  ;;  %v769_v62 = vld [vmem:[%s1668_s7 + $0x50] sm:$0xff]  ;;  %v770_v63 = vld [vmem:[%s1668_s7 + $0x58] sm:$0xff] }
 0x202   :  { %v398_v10 = vadd.f32 %v397_v7, %v316_v3  ;;  %v469_v11 = vadd.f32 %v468_v8, %v324_v4  ;;  %v571_v3 = vld [vmem:[#allocation5 + $0x300] sm:$0xff]  ;;  %v573_v4 = vld [vmem:[#allocation5 + $0x310] sm:$0xff]  ;;  %v578_v7 = vld [vmem:[#allocation5 + $0x338] sm:$0xff] }
 0x203   :  { %v1173_v8 = vpack.c.bf16 %v573_v4, %v571_v3  ;;  %v788_v3 = vld [vmem:[%s1668_s7 + $0xe8] sm:$0xff]  ;;  %v771_v4 = vld [vmem:[%s1668_s7 + $0x60] sm:$0xff] }
 0x204   :  { %1251 = vtanh.f32 %v398_v10  ;;  %v575_v10 = vld [vmem:[#allocation5 + $0x320] sm:$0xff] }
 0x205   :  { %1253 = vtanh.f32 %v396_v9  ;;  %v1175_v9 = vpack.c.bf16 %v578_v7, %v576_v5  ;;  %v772_v7 = vld [vmem:[%s1668_s7 + $0x68] sm:$0xff] }
 0x206   :  { %1255 = vtanh.f32 %v469_v11  ;;  %v577_v11 = vld [vmem:[#allocation5 + $0x330] sm:$0xff] }
 0x207   :  { %v1177_v14 = vpack.c.bf16 %v577_v11, %v575_v10  ;;  %v1229_v10 = vpack.c.bf16 %v772_v7, %v771_v4 }
 0x20e   :  { %v1252_v17 = vpop.eup %1251 }
 0x20f   :  { %v1254_v21 = vpop.eup %1253  ;;  %679 = vmatprep.mubr.f32.mxu1 %v1252_v17  ;;  %v581_v17 = vld [vmem:[#allocation5 + $0x350] sm:$0xff] }
 0x210   :  { %v1256_v24 = vpop.eup %1255  ;;  %680 = vmatmul.mubr.f32.vlgmr.msra.gmra.mrb[2].mxu1 %v1254_v21 }
 0x211   :  { %1142 = vmatpush1.bf16.msra.mxu1 %v1141_v16  ;;  %750 = vmatprep.mubr.f32.mxu1 %v1256_v24  ;;  %v579_v16 = vld [vmem:[#allocation5 + $0x340] sm:$0xff]  ;;  %v588_v24 = vld [vmem:[#allocation5 + $0x388] sm:$0xff] }
 0x212   :  { %1144 = vmatprep.subr.bf16.mxu1 %v1143_v18  ;;  %v584_v18 = vld [vmem:[#allocation5 + $0x368] sm:$0xff]  ;;  %v1181_v20 = vpack.c.bf16 %v581_v17, %v579_v16 }
 0x213   :  { %v1183_v21 = vpack.c.bf16 %v586_v19, %v584_v18 }
 0x215   :  { %1146 = vmatpush1.bf16.msra.mxu1 %v1145_v25  ;;  %v590_v25 = vld [vmem:[#allocation5 + $0x398] sm:$0xff] }
 0x216   :  { %1148 = vmatprep.subr.bf16.mxu1 %v1147_v26  ;;  %v319_v26 = vsub.s32 2, %v1516_v54  ;;  %v1187_v28 = vpack.c.bf16 %v590_v25, %v588_v24  ;;  %v791_v25 = vld [vmem:[%s1669_s8] sm:$0x1] }
 0x218   :  { %v320_v33 = vrot.slane %v1580_v0, %v319_v26 }
 0x219   :  { %1150 = vmatpush1.bf16.msra.mxu1 %v1149_v31  ;;  %v592_v31 = vld [vmem:[#allocation5 + $0x3a8] sm:$0xff] }
 0x21a   :  { %1152 = vmatprep.subr.bf16.mxu1 %v1151_v32  ;;  %v594_v32 = vld [vmem:[#allocation5 + $0x3b8] sm:$0xff]  ;;  %v467_v54 = vadd.f32 %v1588_v6, %v320_v33 }
 0x21b   :  { %v1191_v35 = vpack.c.bf16 %v594_v32, %v592_v31 }
 0x21c   :  { %1257 = vtanh.f32 %v467_v54 }
 0x21d   :  { %1154 = vmatpush1.bf16.msra.mxu1 %v1153_v37  ;;  %v593_v37 = vld [vmem:[#allocation5 + $0x3b0] sm:$0xff] }
 0x21e   :  { %1156 = vmatprep.subr.bf16.mxu1 %v1155_v38  ;;  %v596_v38 = vld [vmem:[#allocation5 + $0x3c8] sm:$0xff]  ;;  %v1193_v40 = vpack.c.bf16 %v593_v37, %v591_v36 }
 0x21f   :  { %v1195_v41 = vpack.c.bf16 %v598_v39, %v596_v38 }
 0x221   :  { %1158 = vmatpush1.bf16.msra.mxu1 %v1157_v43  ;;  %v597_v43 = vld [vmem:[#allocation5 + $0x3d0] sm:$0xff] }
 0x222   :  { %1160 = vmatprep.subr.bf16.mxu1 %v1159_v44  ;;  %v600_v44 = vld [vmem:[#allocation5 + $0x3e8] sm:$0xff]  ;;  %v1197_v0 = vpack.c.bf16 %v597_v43, %v595_v42 }
 0x223   :  { %v1199_v46 = vpack.c.bf16 %v602_v45, %v600_v44 }
 0x225   :  { %1162 = vmatpush1.bf16.msra.mxu1 %v1161_v49  ;;  %v1201_v49 = vpack.c.bf16 %v601_v48, %v599_v47 }
 0x226   :  { %1164 = vmatprep.subr.bf16.mxu1 %v1163_v50  ;;  %v1258_v6 = vpop.eup %1257  ;;  %v783_v50 = vld [vmem:[%s1668_s7 + $0xc0] sm:$0xff] }
 0x227   :  { %v1219_v52 = vpack.c.bf16 %v784_v51, %v783_v50 }
 0x229   :  { %1166 = vmatpush1.bf16.msra.mxu1 %v1165_v58  ;;  %v1221_v58 = vpack.c.bf16 %v768_v56, %v767_v53  ;;  %1220 = vmatprep.subr.bf16.mxu0 %v1219_v52 }
 0x22a   :  { %1168 = vmatprep.subr.bf16.mxu1 %v1167_v59  ;;  %v785_v59 = vld [vmem:[%s1668_s7 + $0xd0] sm:$0xff] }
 0x22b   :  { %1222 = vmatpush3.bf16.msra.mxu0 %v1221_v58  ;;  %v1223_v61 = vpack.c.bf16 %v786_v60, %v785_v59 }
 0x22d   :  { %1170 = vmatpush1.bf16.msra.mxu1 %v1169_v1  ;;  %v1225_v1 = vpack.c.bf16 %v770_v63, %v769_v62  ;;  %1224 = vmatprep.subr.bf16.mxu0 %v1223_v61 }
 0x22e   :  { %1172 = vmatprep.subr.bf16.mxu1 %v1171_v2  ;;  %v787_v2 = vld [vmem:[%s1668_s7 + $0xe0] sm:$0xff] }
 0x22f   :  { %1226 = vmatpush3.bf16.msra.mxu0 %v1225_v1  ;;  %v1227_v5 = vpack.c.bf16 %v788_v3, %v787_v2 }
 0x231   :  { %1174 = vmatpush1.bf16.msra.mxu1 %v1173_v8  ;;  %v789_v8 = vld [vmem:[%s1668_s7 + $0xf0] sm:$0xff]  ;;  %1228 = vmatprep.subr.bf16.mxu0 %v1227_v5 }
 0x232   :  { %1176 = vmatprep.subr.bf16.mxu1 %v1175_v9  ;;  %v790_v9 = vld [vmem:[%s1668_s7 + $0xf8] sm:$0xff] }
 0x233   :  { %v1231_v11 = vpack.c.bf16 %v790_v9, %v789_v8  ;;  %1230 = vmatpush3.bf16.msra.mxu0 %v1229_v10 }
 0x235   :  { %1178 = vmatpush1.bf16.msra.mxu1 %v1177_v14  ;;  %v1233_v14 = vpack.c.bf16 %v774_v13, %v773_v12  ;;  %1232 = vmatprep.subr.bf16.mxu0 %v1231_v11 }
 0x236   :  { %1180 = vmatprep.subr.bf16.mxu1 %v1179_v15  ;;  %v603_v15 = vld [vmem:[%s1667_s6] sm:$0x3]  ;;  %s1342_s6 = smov [#allocation7]  }
 0x237   :  { %1234 = vmatpush3.bf16.msra.mxu0 %v1233_v14  ;;  %v608_v16 = vrot.slane %v603_v15, %v1519_v55  ;;  %v612_v17 = vrot.slane %v603_v15, %v1525_v57  ;;  %s870_s25 = sshll.u32 %s1342_s6, 4  ;;  %s871_s25 = int_to_ptr.vmem [resolvable:$true] %s870_s25 }
 0x238   :  { %s1307_s26 = scalar_lea.vmem %s871_s25, 16  ;;  %s1311_s27 = scalar_lea.vmem %s871_s25, 32 }
 0x239   :  { %1182 = vmatpush1.bf16.msra.mxu1 %v1181_v20  ;;  %p1308_p2 = scmp.ne.s32.totalorder %s871_s25, %s1307_s26  ;;  %p1312_p3 = scmp.lt.s32.totalorder %s871_s25, %s871_s25 }
 0x23a   :  { %1184 = vmatprep.subr.bf16.mxu1 %v1183_v21  ;;  %p1313_p4 = scmp.lt.s32.totalorder %s1311_s27, %s1307_s26 }
 0x23c   :  { %p1314_p5 = por %p1313_p4, %p1312_p3 }
 0x23d   :  { %1186 = vmatpush1.bf16.msra.mxu1 %v1185_v27 }
 0x23e   :  { %1188 = vmatprep.subr.bf16.mxu1 %v1187_v28  ;;  %p1315_p6 = pnand %p1314_p5, %p1308_p2 }
 0x241   :  { %1190 = vmatpush1.bf16.msra.mxu1 %v1189_v34 }
 0x242   :  { %1192 = vmatprep.subr.bf16.mxu1 %v1191_v35 }
 0x245   :  { %1194 = vmatpush1.bf16.msra.mxu1 %v1193_v40 }
 0x246   :  { %1196 = vmatprep.subr.bf16.mxu1 %v1195_v41 }
 0x249   :  { %1198 = vmatpush1.bf16.msra.mxu1 %v1197_v0 }
 0x24a   :  { %1200 = vmatprep.subr.bf16.mxu1 %v1199_v46 }
 0x24d   :  { %1202 = vmatpush1.bf16.msra.mxu1 %v1201_v49 }
 0x250   :  { %751 = vmatmul.mubr.f32.vlgmr.msra.gmra.mrb[2].mxu1 %v1258_v6 }
 0x323   :  { %v752_v18 = vpop.f32.mrb[2].mxu1 }
 0x324   :  { %v1235_v19 = vadd.f32 %v752_v18, %v608_v16  ;;  %v754_v20 = vpop.f32.mrb[3].mxu1 }
 0x325   :  { %v1236_v21 = vadd.f32 %v754_v20, %v612_v17 }
 0x327   :  { %1259 = vtanh.f32 %v1236_v21 }
 0x328   :  { %1261 = vtanh.f32 %v1235_v19 }
 0x331   :  { %v1260_v22 = vpop.eup %1259 }
 0x332   :  { %v1262_v23 = vpop.eup %1261  ;;  %856 = vmatprep.mubr.f32.mxu0 %v1260_v22 }
 0x333   :  { %857 = vmatmul.mubr.f32.vlgmr.msra.gmra.mrb[4].mxu0 %v1262_v23 }
 0x406   :  { %v912_v24 = vpop.f32.mrb[4].mxu0 }
 0x407   :  { %v913_v26 = vpop.f32.mrb[5].mxu0 }
 0x408   :  { %v914_v55 = vadd.f32 %v913_v26, %v912_v24 }
 0x40a   :  { %v859_v57 = vadd.f32 %v914_v55, %v791_v25 }
 0x40c   :  { %863 = vst.msk [vmem:[#allocation7] sm:$0x1] %vm862_vm0, %v859_v57 }
 0x40d   :  { %1318 = shalt.err (!%p1315_p6)
}
 0x40e   :  { %s1319_s8 = scalar_lea.hbm %s1670_s9, 16 }
 0x40f   :  { %p1320_p7 = scmp.ne.s32.totalorder %s1670_s9, %s1319_s8  ;;  %p1323_p8 = scmp.lt.u32.totalorder %s1319_s8, %s1670_s9 }
 0x411   :  { %p1325_p9 = pnand %p1323_p8, %p1320_p7 }
 0x413   :  { %1328 = shalt.err (!%p1325_p9)
}
 0x414   :  { %873 = dma.vmem_to_hbm [thread:$0]  %s871_s25, 16, %s1670_s9, [#allocation4]  }
 0x415   :  { %1333 = dma.done.wait [#allocation4], 16  }
 0x416   :  { %1334 = vsyncadd [#allocation4], 4294967280 }
 0x417   :  { %877 = vsyncpa [#allocation3], 1 }
 0x418   :  { %878 = vsyncpa [#allocation6], 1 }
 0x419   :  { %879 = vsyncpa [#allocation4], 1 }

</bundles_post_ra>
